<compile_context>
chip_gen: v7x
topology: tpu7x:2x2x1
jax: 0.10.0
libtpu: 0.0.40
codegen_flags: <defaults>
</compile_context>

<pallas_src>
import functools

import numpy as np

import jax
import jax.numpy as jnp
from jax import lax
from jax.experimental import pallas as pl
from jax.experimental.pallas import tpu as pltpu


_STATS_SLOTS = 2        # parallel partial-accumulator slots in the stats pass (v7x megacore)
_MIN_NORM_TILES = 4     # keep >= this many row tiles in the normalize pass for 'parallel' sharding


# ---------------------------------------------------------------------------
# Hardware-aware sizing helpers
# ---------------------------------------------------------------------------
def _sublane(dtype):
    """Sublane packing multiple for a dtype: 8 (f32) / 16 (bf16) / 32 (int8, fp8)."""
    return max(8, 32 // max(np.dtype(dtype).itemsize, 1))


def _round_up(v, m):
    return ((v + m - 1) // m) * m


def _vmem_plan():
    """(tile_byte_budget, vmem_limit_bytes, fused_byte_budget), generation aware."""
    cap = None
    try:
        cap = getattr(pltpu.get_tpu_info(), "vmem_capacity_bytes", None)
    except Exception:
        cap = None
    if cap is not None and cap >= 100 * 1024 * 1024:            # v5e / v6e: 128 MiB VMEM
        return 48 * 1024 * 1024, 96 * 1024 * 1024, 24 * 1024 * 1024
    # v7x (64 MiB physical VMEM) or unknown hardware: stay conservative.
    return 16 * 1024 * 1024, 32 * 1024 * 1024, 12 * 1024 * 1024


def _stats_row_tile(n, d, in_dtype, budget):
    """Row tile for the stats pass (only the input tile is double-buffered)."""
    sub = _sublane(in_dtype)
    per_row = d * (2 * np.dtype(in_dtype).itemsize + 12)        # 2x input buf + f32 temps
    tm = max(sub, (budget // per_row) // sub * sub)
    return min(tm, _round_up(n, sub))


def _norm_row_tile(n, d, in_dtype, out_dtype, budget):
    """Row tile for the normalize pass (double-buffered in + out tiles + f32 temps)."""
    sub = _sublane(in_dtype)
    per_row = d * (2 * np.dtype(in_dtype).itemsize
                   + 2 * np.dtype(out_dtype).itemsize + 12)
    tm = max(sub, (budget // per_row) // sub * sub)
    # Keep at least _MIN_NORM_TILES grid steps so the 'parallel' axis can shard
    # across both v7x TensorCores (harmless on single-TC v5e / v6e).
    tm = min(tm, max(sub, _round_up(pl.cdiv(n, _MIN_NORM_TILES), sub)))
    return min(tm, _round_up(n, sub))


# ---------------------------------------------------------------------------
# Fused single-pass kernel: whole matrix resident in VMEM (small / medium N*D)
# ---------------------------------------------------------------------------
def _pairnorm_fused_kernel(x_ref, o_ref, *, n_rows, scale, eps, mode):
    x = x_ref[...].astype(jnp.float32)
    inv_n = 1.0 / float(n_rows)
    mu = jnp.sum(x, axis=0, keepdims=True) * inv_n               # (1, D) column mean
    if mode == "PN":
        xc = x - mu
        tot_sq = jnp.sum(xc * xc, keepdims=True)                 # (1, 1)
        out = xc * (scale * lax.rsqrt(eps + tot_sq * inv_n))
    elif mode == "PN-SI":
        xc = x - mu
        out = xc * (scale * lax.rsqrt(eps + jnp.sum(xc * xc, axis=1, keepdims=True)))
    else:  # "PN-SCS"
        out = x * (scale * lax.rsqrt(eps + jnp.sum(x * x, axis=1, keepdims=True))) - mu
    o_ref[...] = out.astype(o_ref.dtype)


# ---------------------------------------------------------------------------
# Two-pass path, kernel 1: per-slot partial column sums / square sums
# ---------------------------------------------------------------------------
def _pairnorm_stats_kernel(x_ref, colsum_ref, sqsum_ref, *,
                           tm, n_rows, n_tiles, tiles_per_slot):
    # Grid: (slots 'parallel', tiles_per_slot 'arbitrary').
    # colsum_ref / sqsum_ref are (1, 8, D) partial accumulators per parallel slot;
    # the final cross-sublane / cross-slot reduce is a tiny XLA op in the wrapper.
    p = pl.program_id(0)
    i = pl.program_id(1)
    tile_idx = p * tiles_per_slot + i

    @pl.when(i == 0)
    def _init():
        colsum_ref[...] = jnp.zeros_like(colsum_ref)
        sqsum_ref[...] = jnp.zeros_like(sqsum_ref)

    @pl.when(tile_idx < n_tiles)
    def _accumulate():
        # The ragged last tile reads unspecified data past row n_rows: mask it here
        # (no jnp.pad of x in HBM).  For very large N (millions of rows) a Kahan /
        # pairwise scheme could be added; plain f32 is fine for typical graph sizes.
        row_ids = tile_idx * tm + lax.broadcasted_iota(jnp.int32, (tm, 1), 0)
        x = jnp.where(row_ids < n_rows, x_ref[...].astype(jnp.float32), 0.0)
        xg = x.reshape(tm // 8, 8, x.shape[-1])   # fold rows onto sublanes: VPU-only adds
        colsum_ref[...] += jnp.sum(xg, axis=0, keepdims=True)
        sqsum_ref[...] += jnp.sum(xg * xg, axis=0, keepdims=True)


# ---------------------------------------------------------------------------
# Two-pass path, kernel 2: lane-dense, fully parallel normalization
# ---------------------------------------------------------------------------
def _pairnorm_norm_kernel(s_ref, mu_ref, x_ref, o_ref, *, eps, mode):
    x = x_ref[...].astype(jnp.float32)
    mu = mu_ref[...]                     # (1, D) column mean, f32 (VMEM)
    s = s_ref[0, 0]                      # scale (or scale / rownorm_mean for 'PN'), SMEM
    if mode == "PN":
        out = (x - mu) * s               # all scalar prep hoisted to the wrapper
    elif mode == "PN-SI":
        xc = x - mu
        out = xc * (lax.rsqrt(eps + jnp.sum(xc * xc, axis=1, keepdims=True)) * s)
    else:  # "PN-SCS"
        out = x * (lax.rsqrt(eps + jnp.sum(x * x, axis=1, keepdims=True)) * s) - mu
    o_ref[...] = out.astype(o_ref.dtype)


# ---------------------------------------------------------------------------
# Wrapper reproducing PairNorm.forward
# ---------------------------------------------------------------------------
def pairnorm(x, mode="PN", scale=1.0, eps=1e-6, *,
             _force_two_pass=False, _row_tile=None):
    """PairNorm.forward for a (num_nodes, num_features) node-feature matrix."""
    assert mode in ("None", "PN", "PN-SI", "PN-SCS")
    if mode == "None":
        return x
    assert x.ndim == 2, "PairNorm expects a 2-D (num_nodes, num_features) input"
    n, d = x.shape
    scale = float(scale)
    eps = float(eps)

    tile_budget, vmem_limit, fused_budget = _vmem_plan()
    bytes_in = np.dtype(x.dtype).itemsize
    bytes_out = np.dtype(x.dtype).itemsize

    # ----- fused single-pass path: whole matrix + f32 working copies fit in VMEM -----
    fused_bytes = n * d * (bytes_in + bytes_out + 12)
    if not _force_two_pass and fused_bytes <= fused_budget:
        return pl.pallas_call(
            functools.partial(_pairnorm_fused_kernel,
                              n_rows=n, scale=scale, eps=eps, mode=mode),
            out_shape=jax.ShapeDtypeStruct((n, d), x.dtype),
            compiler_params=pltpu.CompilerParams(vmem_limit_bytes=vmem_limit),
        )(x)

    # ----- two-pass path: column stats, then parallel normalize ----------------------
    if _row_tile is not None:
        sub = _sublane(x.dtype)
        tm_forced = min(_round_up(max(int(_row_tile), sub), sub), _round_up(n, sub))
        tm_stats = tm_norm = tm_forced
    else:
        tm_stats = _stats_row_tile(n, d, x.dtype, tile_budget)
        tm_norm = _norm_row_tile(n, d, x.dtype, x.dtype, tile_budget)

    # Pass 1: partial column sums / square sums, sharded across _STATS_SLOTS parallel
    # accumulator slots (keeps both v7x TensorCores busy; no effect on v5e/v6e).
    n_tiles = pl.cdiv(n, tm_stats)
    slots = min(_STATS_SLOTS, n_tiles)
    tiles_per_slot = pl.cdiv(n_tiles, slots)

    def x_stats_map(p, i):
        # Clamp so the (rare) leftover grid step re-reads the last real tile instead
        # of issuing an out-of-bounds DMA; its contribution is skipped in-kernel.
        return (jnp.minimum(p * tiles_per_slot + i, n_tiles - 1), 0)

    colsum_p, sqsum_p = pl.pallas_call(
        functools.partial(_pairnorm_stats_kernel, tm=tm_stats, n_rows=n,
                          n_tiles=n_tiles, tiles_per_slot=tiles_per_slot),
        out_shape=(jax.ShapeDtypeStruct((slots, 8, d), jnp.float32),
                   jax.ShapeDtypeStruct((slots, 8, d), jnp.float32)),
        grid_spec=pltpu.PrefetchScalarGridSpec(
            num_scalar_prefetch=0,
            grid=(slots, tiles_per_slot),
            in_specs=[pl.BlockSpec((tm_stats, d), x_stats_map)],
            out_specs=[pl.BlockSpec((1, 8, d), lambda p, i: (p, 0, 0)),
                       pl.BlockSpec((1, 8, d), lambda p, i: (p, 0, 0))],
        ),
        compiler_params=pltpu.CompilerParams(
            dimension_semantics=("parallel", "arbitrary"),
            vmem_limit_bytes=vmem_limit,
        ),
    )(x)

    # Tiny wrapper-side reductions: column mean and (for 'PN') the global scalar.
    inv_n = 1.0 / float(n)
    mu = (jnp.sum(colsum_p, axis=(0, 1)) * inv_n).reshape(1, d).astype(jnp.float32)
    if mode == "PN":
        # sum_ij (x_ij - mu_j)^2 == sum_ij x_ij^2 - N * ||mu||^2; clamp against f32
        # cancellation for poorly-centred inputs.
        tot_sq = jnp.maximum(jnp.sum(sqsum_p) - float(n) * jnp.sum(mu * mu), 0.0)
        s_val = scale / jnp.sqrt(eps + tot_sq * inv_n)
    else:
        s_val = scale
    s = jnp.asarray(s_val, dtype=jnp.float32).reshape(1, 1)

    # Pass 2: lane-dense, fully 'parallel' normalization straight into an (N, D)
    # output (no pad / slice HBM round-trips; OOB rows of the last tile are dropped).
    # NOTE: if D % 128 != 0, output stores become masked vst.msk; pad the feature
    # dim to a multiple of 128 upstream for full store bandwidth.
    n_norm_tiles = pl.cdiv(n, tm_norm)
    out = pl.pallas_call(
        functools.partial(_pairnorm_norm_kernel, eps=eps, mode=mode),
        out_shape=jax.ShapeDtypeStruct((n, d), x.dtype),
        grid_spec=pltpu.PrefetchScalarGridSpec(
            num_scalar_prefetch=0,
            grid=(n_norm_tiles,),
            in_specs=[
                pl.BlockSpec(memory_space=pltpu.MemorySpace.SMEM),   # s: (1, 1) scalar
                pl.BlockSpec((1, d), lambda i: (0, 0)),              # mu: (1, D) f32
                pl.BlockSpec((tm_norm, d), lambda i: (i, 0)),        # x row tile
            ],
            out_specs=pl.BlockSpec((tm_norm, d), lambda i: (i, 0)),
        ),
        compiler_params=pltpu.CompilerParams(
            dimension_semantics=("parallel",),
            vmem_limit_bytes=vmem_limit,
        ),
    )(s, mu, x)
    return out


# ---------------------------------------------------------------------------
# Reference (plain JAX) for validation
# ---------------------------------------------------------------------------
def pairnorm_ref(x, mode="PN", scale=1.0, eps=1e-6):
    if mode == "None":
        return x
    col_mean = x.mean(axis=0)
    if mode == "PN":
        xc = x - col_mean
        rownorm_mean = jnp.sqrt(eps + (xc ** 2).sum(axis=1).mean())
        return scale * xc / rownorm_mean
    if mode == "PN-SI":
        xc = x - col_mean
        return scale * xc / jnp.sqrt(eps + (xc ** 2).sum(axis=1, keepdims=True))
    rownorm = jnp.sqrt(eps + (x ** 2).sum(axis=1, keepdims=True))
    return scale * x / rownorm - col_mean


# ---------------------------------------------------------------------------
if __name__ == "__main__":
    key0, key1 = jax.random.split(jax.random.PRNGKey(0))
    modes = ("PN", "PN-SI", "PN-SCS", "None")

    # (num_nodes, hidden) node-feature matrix; PairNorm runs after each graph conv.
    N, D = 256, 128
    x = jax.random.normal(key0, (N, D), dtype=jnp.float32) * 1.5 + 0.3

    # 1) Fused single-pass path (whole matrix resident in VMEM).
    for mode in modes:
        fn = jax.jit(functools.partial(pairnorm, mode=mode, scale=1.0))
        out = jax.block_until_ready(fn(x))
        ref = pairnorm_ref(x, mode=mode, scale=1.0)
        assert out.shape == x.shape, (mode, out.shape)
        assert jnp.allclose(out, ref, atol=1e-4, rtol=1e-4), f"fused mismatch ({mode})"

    # 2) Two-pass path forced at small shapes with a ragged last row tile
    #    (N2 % tile != 0), exercising the in-kernel masking, the parallel partial
    #    accumulators, and the hoisted scalar path.
    N2 = 300
    x2 = jax.random.normal(key1, (N2, D), dtype=jnp.float32) - 0.2
    for mode in modes:
        fn = jax.jit(functools.partial(pairnorm, mode=mode, scale=2.0,
                                       _force_two_pass=True, _row_tile=64))
        out = jax.block_until_ready(fn(x2))
        ref = pairnorm_ref(x2, mode=mode, scale=2.0)
        assert out.shape == x2.shape, (mode, out.shape)
        assert jnp.allclose(out, ref, atol=1e-4, rtol=1e-4), f"two-pass mismatch ({mode})"

    print("KERNEL_OK")
</pallas_src>

<mosaic_0001>
module attributes {stable_mosaic.version = 11 : i64} {
  func.func @_pairnorm_fused_kernel(%arg0: memref<256x128xf32, #tpu.memory_space<vmem>>, %arg1: memref<256x128xf32, #tpu.memory_space<vmem>>) attributes {dimension_semantics = [], scalar_prefetch = 0 : i64, scratch_operands = 0 : i64, tpu.core_type = #tpu.core_type<tc>} {
    %c0 = arith.constant 0 : index
    %c0_0 = arith.constant 0 : index
    %0 = vector.load %arg0[%c0, %c0_0] : memref<256x128xf32, #tpu.memory_space<vmem>>, vector<256x128xf32>
    %cst = arith.constant dense<0.000000e+00> : vector<128xf32>
    %1 = vector.multi_reduction <add>, %0, %cst [0] : vector<256x128xf32> to vector<128xf32>
    %2 = vector.shape_cast %1 : vector<128xf32> to vector<1x128xf32>
    %cst_1 = arith.constant 3.906250e-03 : f32
    %3 = vector.broadcast %cst_1 : f32 to vector<1x128xf32>
    %4 = arith.mulf %2, %3 : vector<1x128xf32>
    %5 = vector.broadcast %4 : vector<1x128xf32> to vector<256x128xf32>
    %6 = arith.subf %0, %5 : vector<256x128xf32>
    %7 = arith.mulf %6, %6 : vector<256x128xf32>
    %8 = vector.shape_cast %7 : vector<256x128xf32> to vector<1x256x128xf32>
    %cst_2 = arith.constant dense<0.000000e+00> : vector<1xf32>
    %9 = vector.multi_reduction <add>, %8, %cst_2 [1, 2] : vector<1x256x128xf32> to vector<1xf32>
    %10 = vector.shape_cast %9 : vector<1xf32> to vector<1x1x1xf32>
    %11 = vector.extract %10[0, 0, 0] : f32 from vector<1x1x1xf32>
    %12 = vector.broadcast %11 : f32 to vector<1x1xf32>
    %cst_3 = arith.constant 3.906250e-03 : f32
    %13 = vector.broadcast %cst_3 : f32 to vector<1x1xf32>
    %14 = arith.mulf %12, %13 : vector<1x1xf32>
    %cst_4 = arith.constant 9.99999997E-7 : f32
    %15 = vector.broadcast %cst_4 : f32 to vector<1x1xf32>
    %16 = arith.addf %15, %14 : vector<1x1xf32>
    %17 = math.rsqrt %16 : vector<1x1xf32>
    %cst_5 = arith.constant 1.000000e+00 : f32
    %18 = vector.broadcast %cst_5 : f32 to vector<1x1xf32>
    %19 = arith.mulf %18, %17 : vector<1x1xf32>
    %20 = vector.broadcast %19 : vector<1x1xf32> to vector<256x128xf32>
    %21 = arith.mulf %6, %20 : vector<256x128xf32>
    %c0_6 = arith.constant 0 : index
    %c0_7 = arith.constant 0 : index
    %22 = vector.load %arg1[%c0_6, %c0_7] : memref<256x128xf32, #tpu.memory_space<vmem>>, vector<256x128xf32>
    tpu.vector_store %arg1[%c0_6, %c0_7], %21 {strides = array<i32>} : memref<256x128xf32, #tpu.memory_space<vmem>>, vector<256x128xf32>,
    return
  }
}

</mosaic_0001>

<bundles_post_ra>
// kernel: pairnorm.1
= control target key start
LH: loop header
LB: loop body
LE: loop exit
PB: predicated region body
PF: predicated region fallthrough
CT: control target
= control target key end

     0   :  { %6 = vsyncpa [#allocation3], 0  ;;  %s704_s0 = inlined_call_operand.hbm [shape: f32[256,128], index: 0, kind: input, shape index: {}]   ;;  %s705_s1 = inlined_call_operand.hbm [shape: f32[256,128], index: 1, kind: output, shape index: {}]  }
   0x1   :  { %7 = vsyncpa [#allocation4], 0  ;;  %s338_s6 = smov [#allocation2]   ;;  %s290_s10 = scalar_lea.hbm %s704_s0, 4096 }
   0x2   :  { %s13_s7 = sshll.u32 %s338_s6, 4  ;;  %p291_p0 = scmp.ne.s32.totalorder %s704_s0, %s290_s10  ;;  %s14_s7 = int_to_ptr.vmem [resolvable:$true] %s13_s7 }
   0x3   :  { %p294_p1 = scmp.lt.u32.totalorder %s290_s10, %s704_s0 }
   0x5   :  { %p296_p2 = pnand %p294_p1, %p291_p0 }
   0x7   :  { %299 = shalt.err (!%p296_p2)
}
   0x8   :  { %s300_s15 = scalar_lea.vmem %s14_s7, 4096  ;;  %p305_p4 = scmp.lt.s32.totalorder %s14_s7, %s14_s7 }
   0x9   :  { %p301_p3 = scmp.ne.s32.totalorder %s14_s7, %s300_s15  ;;  %p306_p5 = scmp.lt.s32.totalorder %s300_s15, %s300_s15 }
   0xb   :  { %p307_p6 = por %p306_p5, %p305_p4 }
   0xd   :  { %p308_p7 = pnand %p307_p6, %p301_p3 }
   0xf   :  { %311 = shalt.err (!%p308_p7)
}
  0x10   :  { %s339_s16 = smov 128   ;;  %s340_s17 = smov 8  }
  0x11   :  { %19 = dma.hbm_to_vmem [thread:$0]  %s704_s0, 4096, %s14_s7, [#allocation3], %s339_s16, %s339_s16, %s340_s17  }
  0x12   :  { %334 = dma.done.wait [#allocation3], 4096  }
  0x13   :  { %335 = vsyncadd [#allocation3], 4294963200  ;;  %v367_v0 = vld [vmem:[#allocation2] sm:$0xff]  ;;  %v369_v1 = vld [vmem:[#allocation2 + $0x8] sm:$0xff]  ;;  %s341_s20 = smov [#allocation5]  }
  0x14   :  { %v371_v2 = vld [vmem:[#allocation2 + $0x10] sm:$0xff]  ;;  %v55_v3 = vadd.f32 %v369_v1, %v367_v0  ;;  %v375_v4 = vld [vmem:[#allocation2 + $0x18] sm:$0xff]  ;;  %v378_v6 = vld [vmem:[#allocation2 + $0x20] sm:$0xff]  ;;  %s270_s21 = sshll.u32 %s341_s20, 4  ;;  %s271_s21 = int_to_ptr.vmem [resolvable:$true] %s270_s21 }
  0x15   :  { %v381_v8 = vld [vmem:[#allocation2 + $0x28] sm:$0xff]  ;;  %v384_v10 = vld [vmem:[#allocation2 + $0x30] sm:$0xff]  ;;  %v387_v12 = vld [vmem:[#allocation2 + $0x38] sm:$0xff]  ;;  %s312_s22 = scalar_lea.vmem %s271_s21, 4096  ;;  %p317_p9 = scmp.lt.s32.totalorder %s271_s21, %s271_s21 }
  0x16   :  { %v56_v5 = vadd.f32 %v55_v3, %v371_v2  ;;  %v390_v14 = vld [vmem:[#allocation2 + $0x40] sm:$0xff]  ;;  %v393_v16 = vld [vmem:[#allocation2 + $0x48] sm:$0xff]  ;;  %v396_v18 = vld [vmem:[#allocation2 + $0x50] sm:$0xff]  ;;  %p313_p8 = scmp.ne.s32.totalorder %s271_s21, %s312_s22  ;;  %p318_p10 = scmp.lt.s32.totalorder %s312_s22, %s312_s22 }
  0x17   :  { %v399_v20 = vld [vmem:[#allocation2 + $0x58] sm:$0xff]  ;;  %v402_v22 = vld [vmem:[#allocation2 + $0x60] sm:$0xff]  ;;  %v405_v24 = vld [vmem:[#allocation2 + $0x68] sm:$0xff] }
  0x18   :  { %v57_v7 = vadd.f32 %v56_v5, %v375_v4  ;;  %v408_v26 = vld [vmem:[#allocation2 + $0x70] sm:$0xff]  ;;  %v411_v28 = vld [vmem:[#allocation2 + $0x78] sm:$0xff]  ;;  %v414_v30 = vld [vmem:[#allocation2 + $0x80] sm:$0xff]  ;;  %p319_p11 = por %p318_p10, %p317_p9 }
  0x19   :  { %v417_v32 = vld [vmem:[#allocation2 + $0x88] sm:$0xff]  ;;  %v420_v34 = vld [vmem:[#allocation2 + $0x90] sm:$0xff]  ;;  %v423_v36 = vld [vmem:[#allocation2 + $0x98] sm:$0xff] }
  0x1a   :  { %v58_v9 = vadd.f32 %v57_v7, %v378_v6  ;;  %v426_v38 = vld [vmem:[#allocation2 + $0xa0] sm:$0xff]  ;;  %v429_v40 = vld [vmem:[#allocation2 + $0xa8] sm:$0xff]  ;;  %v432_v42 = vld [vmem:[#allocation2 + $0xb0] sm:$0xff]  ;;  %p320_p12 = pnand %p319_p11, %p313_p8 }
  0x1b   :  { %v435_v44 = vld [vmem:[#allocation2 + $0xb8] sm:$0xff]  ;;  %v438_v46 = vld [vmem:[#allocation2 + $0xc0] sm:$0xff]  ;;  %v441_v48 = vld [vmem:[#allocation2 + $0xc8] sm:$0xff] }
  0x1c   :  { %v59_v11 = vadd.f32 %v58_v9, %v381_v8  ;;  %v444_v50 = vld [vmem:[#allocation2 + $0xd0] sm:$0xff]  ;;  %v447_v52 = vld [vmem:[#allocation2 + $0xd8] sm:$0xff]  ;;  %v450_v54 = vld [vmem:[#allocation2 + $0xe0] sm:$0xff] }
  0x1d   :  { %v453_v56 = vld [vmem:[#allocation2 + $0xe8] sm:$0xff]  ;;  %v456_v58 = vld [vmem:[#allocation2 + $0xf0] sm:$0xff]  ;;  %v459_v60 = vld [vmem:[#allocation2 + $0xf8] sm:$0xff] }
  0x1e   :  { %v60_v13 = vadd.f32 %v59_v11, %v384_v10 }
  0x20   :  { %v61_v15 = vadd.f32 %v60_v13, %v387_v12 }
  0x22   :  { %v62_v17 = vadd.f32 %v61_v15, %v390_v14 }
  0x24   :  { %v63_v19 = vadd.f32 %v62_v17, %v393_v16 }
  0x26   :  { %v64_v21 = vadd.f32 %v63_v19, %v396_v18 }
  0x28   :  { %v65_v23 = vadd.f32 %v64_v21, %v399_v20 }
  0x2a   :  { %v66_v25 = vadd.f32 %v65_v23, %v402_v22 }
  0x2c   :  { %v67_v27 = vadd.f32 %v66_v25, %v405_v24 }
  0x2e   :  { %v68_v29 = vadd.f32 %v67_v27, %v408_v26 }
  0x30   :  { %v69_v31 = vadd.f32 %v68_v29, %v411_v28 }
  0x32   :  { %v70_v33 = vadd.f32 %v69_v31, %v414_v30 }
  0x34   :  { %v71_v35 = vadd.f32 %v70_v33, %v417_v32 }
  0x36   :  { %v72_v37 = vadd.f32 %v71_v35, %v420_v34 }
  0x38   :  { %v73_v39 = vadd.f32 %v72_v37, %v423_v36 }
  0x3a   :  { %v74_v41 = vadd.f32 %v73_v39, %v426_v38 }
  0x3c   :  { %v75_v43 = vadd.f32 %v74_v41, %v429_v40 }
  0x3e   :  { %v76_v45 = vadd.f32 %v75_v43, %v432_v42 }
  0x40   :  { %v77_v47 = vadd.f32 %v76_v45, %v435_v44 }
  0x42   :  { %v78_v49 = vadd.f32 %v77_v47, %v438_v46 }
  0x44   :  { %v79_v51 = vadd.f32 %v78_v49, %v441_v48 }
  0x46   :  { %v80_v53 = vadd.f32 %v79_v51, %v444_v50 }
  0x48   :  { %v81_v55 = vadd.f32 %v80_v53, %v447_v52 }
  0x4a   :  { %v82_v57 = vadd.f32 %v81_v55, %v450_v54 }
  0x4c   :  { %v83_v59 = vadd.f32 %v82_v57, %v453_v56 }
  0x4e   :  { %v84_v61 = vadd.f32 %v83_v59, %v456_v58 }
  0x50   :  { %v85_v62 = vadd.f32 %v84_v61, %v459_v60 }
  0x52   :  { %v86_v63 = vrot.slane %v85_v62, 4 }
  0x54   :  { %v87_v3 = vadd.f32 %v86_v63, %v85_v62 }
  0x56   :  { %v88_v5 = vrot.slane %v87_v3, 2 }
  0x58   :  { %v89_v7 = vadd.f32 %v88_v5, %v87_v3 }
  0x5a   :  { %v90_v9 = vrot.slane %v89_v7, 1 }
  0x5c   :  { %v91_v11 = vadd.f32 %v90_v9, %v89_v7 }
  0x5e   :  { %v463_v13 = vmul.f32 0.00390625, %v91_v11 }
  0x60   :  { %v467_v15 = vsub.f32 %v367_v0, %v463_v13  ;;  %v471_v17 = vsub.f32 %v369_v1, %v463_v13  ;;  %v475_v19 = vsub.f32 %v371_v2, %v463_v13  ;;  %v479_v21 = vsub.f32 %v375_v4, %v463_v13 }
  0x61   :  { %v487_v0 = vsub.f32 %v378_v6, %v463_v13  ;;  %v493_v2 = vsub.f32 %v381_v8, %v463_v13  ;;  %v499_v29 = vsub.f32 %v384_v10, %v463_v13  ;;  %v505_v33 = vsub.f32 %v387_v12, %v463_v13 }
  0x62   :  { %v125_v23 = vmul.f32 %v467_v15, %v467_v15  ;;  %v126_v25 = vmul.f32 %v471_v17, %v471_v17  ;;  %v127_v1 = vmul.f32 %v475_v19, %v475_v19  ;;  %v128_v4 = vmul.f32 %v479_v21, %v479_v21 }
  0x63   :  { %v129_v31 = vmul.f32 %v487_v0, %v487_v0  ;;  %v130_v8 = vmul.f32 %v493_v2, %v493_v2  ;;  %v511_v37 = vsub.f32 %v390_v14, %v463_v13  ;;  %v131_v10 = vmul.f32 %v499_v29, %v499_v29 }
  0x64   :  { %v157_v27 = vadd.f32 %v126_v25, %v125_v23  ;;  %v517_v41 = vsub.f32 %v393_v16, %v463_v13  ;;  %v132_v12 = vmul.f32 %v505_v33, %v505_v33  ;;  %v523_v45 = vsub.f32 %v396_v18, %v463_v13 }
  0x65   :  { %v133_v14 = vmul.f32 %v511_v37, %v511_v37  ;;  %v529_v49 = vsub.f32 %v399_v20, %v463_v13  ;;  %v535_v53 = vsub.f32 %v402_v22, %v463_v13  ;;  %v541_v57 = vsub.f32 %v405_v24, %v463_v13 }
  0x66   :  { %v158_v6 = vadd.f32 %v157_v27, %v127_v1  ;;  %v134_v16 = vmul.f32 %v517_v41, %v517_v41  ;;  %v135_v18 = vmul.f32 %v523_v45, %v523_v45  ;;  %v547_v61 = vsub.f32 %v408_v26, %v463_v13 }
  0x67   :  { %v136_v20 = vmul.f32 %v529_v49, %v529_v49  ;;  %v137_v22 = vmul.f32 %v535_v53, %v535_v53  ;;  %v553_v63 = vsub.f32 %v411_v28, %v463_v13  ;;  %v138_v24 = vmul.f32 %v541_v57, %v541_v57 }
  0x68   :  { %v159_v35 = vadd.f32 %v158_v6, %v128_v4  ;;  %v559_v5 = vsub.f32 %v414_v30, %v463_v13  ;;  %v139_v26 = vmul.f32 %v547_v61, %v547_v61  ;;  %v565_v9 = vsub.f32 %v417_v32, %v463_v13 }
  0x69   :  { %v140_v28 = vmul.f32 %v553_v63, %v553_v63  ;;  %v571_v23 = vsub.f32 %v420_v34, %v463_v13  ;;  %v577_v1 = vsub.f32 %v423_v36, %v463_v13  ;;  %v583_v27 = vsub.f32 %v426_v38, %v463_v13 }
  0x6a   :  { %v160_v39 = vadd.f32 %v159_v35, %v129_v31  ;;  %v141_v30 = vmul.f32 %v559_v5, %v559_v5  ;;  %v142_v32 = vmul.f32 %v565_v9, %v565_v9  ;;  %v589_v6 = vsub.f32 %v429_v40, %v463_v13 }
  0x6b   :  { %v143_v34 = vmul.f32 %v571_v23, %v571_v23  ;;  %v144_v36 = vmul.f32 %v577_v1, %v577_v1  ;;  %v595_v35 = vsub.f32 %v432_v42, %v463_v13  ;;  %v145_v38 = vmul.f32 %v583_v27, %v583_v27 }
  0x6c   :  { %v161_v43 = vadd.f32 %v160_v39, %v130_v8  ;;  %v601_v39 = vsub.f32 %v435_v44, %v463_v13  ;;  %v146_v40 = vmul.f32 %v589_v6, %v589_v6 }
  0x6d   :  { %v147_v42 = vmul.f32 %v595_v35, %v595_v35 }
  0x6e   :  { %v162_v47 = vadd.f32 %v161_v43, %v131_v10  ;;  %v607_v43 = vsub.f32 %v438_v46, %v463_v13  ;;  %v148_v44 = vmul.f32 %v601_v39, %v601_v39 }
  0x70   :  { %v163_v51 = vadd.f32 %v162_v47, %v132_v12  ;;  %v613_v47 = vsub.f32 %v441_v48, %v463_v13  ;;  %v149_v46 = vmul.f32 %v607_v43, %v607_v43 }
  0x72   :  { %v164_v55 = vadd.f32 %v163_v51, %v133_v14  ;;  %v619_v51 = vsub.f32 %v444_v50, %v463_v13  ;;  %v150_v48 = vmul.f32 %v613_v47, %v613_v47 }
  0x74   :  { %v165_v59 = vadd.f32 %v164_v55, %v134_v16  ;;  %v625_v55 = vsub.f32 %v447_v52, %v463_v13  ;;  %v151_v50 = vmul.f32 %v619_v51, %v619_v51 }
  0x76   :  { %v166_v62 = vadd.f32 %v165_v59, %v135_v18  ;;  %v631_v59 = vsub.f32 %v450_v54, %v463_v13  ;;  %v152_v52 = vmul.f32 %v625_v55, %v625_v55 }
  0x78   :  { %v167_v3 = vadd.f32 %v166_v62, %v136_v20  ;;  %v637_v62 = vsub.f32 %v453_v56, %v463_v13  ;;  %v153_v54 = vmul.f32 %v631_v59, %v631_v59 }
  0x7a   :  { %v168_v7 = vadd.f32 %v167_v3, %v137_v22  ;;  %v643_v3 = vsub.f32 %v456_v58, %v463_v13  ;;  %v154_v56 = vmul.f32 %v637_v62, %v637_v62 }
  0x7c   :  { %v169_v11 = vadd.f32 %v168_v7, %v138_v24  ;;  %v649_v7 = vsub.f32 %v459_v60, %v463_v13 }
  0x7e   :  { %v170_v25 = vadd.f32 %v169_v11, %v139_v26  ;;  %v155_v11 = vmul.f32 %v643_v3, %v643_v3  ;;  %v156_v58 = vmul.f32 %v649_v7, %v649_v7 }
  0x80   :  { %v171_v4 = vadd.f32 %v170_v25, %v140_v28 }
  0x82   :  { %v172_v31 = vadd.f32 %v171_v4, %v141_v30 }
  0x84   :  { %v173_v8 = vadd.f32 %v172_v31, %v142_v32 }
  0x86   :  { %v174_v10 = vadd.f32 %v173_v8, %v143_v34 }
  0x88   :  { %v175_v12 = vadd.f32 %v174_v10, %v144_v36 }
  0x8a   :  { %v176_v14 = vadd.f32 %v175_v12, %v145_v38 }
  0x8c   :  { %v177_v16 = vadd.f32 %v176_v14, %v146_v40 }
  0x8e   :  { %v178_v18 = vadd.f32 %v177_v16, %v147_v42 }
  0x90   :  { %v179_v20 = vadd.f32 %v178_v18, %v148_v44 }
  0x92   :  { %v180_v22 = vadd.f32 %v179_v20, %v149_v46 }
  0x94   :  { %v181_v24 = vadd.f32 %v180_v22, %v150_v48 }
  0x96   :  { %v182_v26 = vadd.f32 %v181_v24, %v151_v50 }
  0x98   :  { %v183_v28 = vadd.f32 %v182_v26, %v152_v52 }
  0x9a   :  { %v184_v30 = vadd.f32 %v183_v28, %v153_v54 }
  0x9c   :  { %v185_v25 = vadd.f32 %v184_v30, %v154_v56 }
  0x9e   :  { %v186_v32 = vadd.f32 %v185_v25, %v155_v11 }
  0xa0   :  { %v187_v4 = vadd.f32 %v186_v32, %v156_v58 }
  0xa2   :  { %188 = vadd.xlane.f32.xlu0 %v187_v4 }
 0x12f   :  { %v189_v34 = vpop.xlane.xlu0 %188 }
 0x130   :  { %v190_v31 = vrot.slane %v189_v34, 4 }
 0x132   :  { %v191_v36 = vadd.f32 %v190_v31, %v189_v34 }
 0x134   :  { %v192_v60 = vrot.slane %v191_v36, 2 }
 0x136   :  { %v193_v13 = vadd.f32 %v192_v60, %v191_v36 }
 0x138   :  { %v194_v8 = vrot.slane %v193_v13, 1 }
 0x13a   :  { %v195_v38 = vadd.f32 %v194_v8, %v193_v13 }
 0x13c   :  { %282 = vpush %v195_v38 }
 0x16d   :  { %s283_s0 = spop %282 }
 0x16e   :  { %v197_v10 = vstv %s283_s0 }
 0x16f   :  { %v198_v40 = vmul.f32 0.00390625, %v197_v10 }
 0x171   :  { %v199_v12 = vadd.f32 1e-06, %v198_v40 }
 0x173   :  { %288 = vrsqrt.f32 %v199_v12 }
 0x17d   :  { %v289_v42 = vpop.eup %288 }
 0x17e   :  { %v201_v14 = vmul.f32 %v289_v42, %v467_v15  ;;  %v202_v44 = vmul.f32 %v289_v42, %v471_v17  ;;  %v203_v16 = vmul.f32 %v289_v42, %v475_v19  ;;  %v204_v46 = vmul.f32 %v289_v42, %v479_v21 }
 0x17f   :  { %v205_v18 = vmul.f32 %v289_v42, %v487_v0  ;;  %v206_v48 = vmul.f32 %v289_v42, %v493_v2  ;;  %v207_v20 = vmul.f32 %v289_v42, %v499_v29  ;;  %v208_v50 = vmul.f32 %v289_v42, %v505_v33 }
 0x180   :  { %v209_v22 = vmul.f32 %v289_v42, %v511_v37  ;;  %v210_v52 = vmul.f32 %v289_v42, %v517_v41  ;;  %v211_v15 = vmul.f32 %v289_v42, %v523_v45  ;;  %v212_v17 = vmul.f32 %v289_v42, %v529_v49  ;;  %233 = vst [vmem:[#allocation5] sm:$0xff] %v201_v14 }
 0x181   :  { %234 = vst [vmem:[#allocation5 + $0x8] sm:$0xff] %v202_v44  ;;  %235 = vst [vmem:[#allocation5 + $0x10] sm:$0xff] %v203_v16  ;;  %v213_v19 = vmul.f32 %v289_v42, %v535_v53  ;;  %v214_v21 = vmul.f32 %v289_v42, %v541_v57  ;;  %v215_v0 = vmul.f32 %v289_v42, %v547_v61 }
 0x182   :  { %236 = vst [vmem:[#allocation5 + $0x18] sm:$0xff] %v204_v46  ;;  %v216_v2 = vmul.f32 %v289_v42, %v553_v63  ;;  %237 = vst [vmem:[#allocation5 + $0x20] sm:$0xff] %v205_v18  ;;  %v217_v29 = vmul.f32 %v289_v42, %v559_v5  ;;  %v218_v33 = vmul.f32 %v289_v42, %v565_v9 }
 0x183   :  { %238 = vst [vmem:[#allocation5 + $0x28] sm:$0xff] %v206_v48  ;;  %239 = vst [vmem:[#allocation5 + $0x30] sm:$0xff] %v207_v20  ;;  %v219_v37 = vmul.f32 %v289_v42, %v571_v23  ;;  %v220_v41 = vmul.f32 %v289_v42, %v577_v1  ;;  %v221_v45 = vmul.f32 %v289_v42, %v583_v27 }
 0x184   :  { %240 = vst [vmem:[#allocation5 + $0x38] sm:$0xff] %v208_v50  ;;  %241 = vst [vmem:[#allocation5 + $0x40] sm:$0xff] %v209_v22  ;;  %v222_v49 = vmul.f32 %v289_v42, %v589_v6  ;;  %v223_v53 = vmul.f32 %v289_v42, %v595_v35  ;;  %v224_v57 = vmul.f32 %v289_v42, %v601_v39 }
 0x185   :  { %242 = vst [vmem:[#allocation5 + $0x48] sm:$0xff] %v210_v52  ;;  %243 = vst [vmem:[#allocation5 + $0x50] sm:$0xff] %v211_v15  ;;  %v225_v61 = vmul.f32 %v289_v42, %v607_v43  ;;  %v226_v63 = vmul.f32 %v289_v42, %v613_v47  ;;  %v227_v5 = vmul.f32 %v289_v42, %v619_v51 }
 0x186   :  { %244 = vst [vmem:[#allocation5 + $0x58] sm:$0xff] %v212_v17  ;;  %245 = vst [vmem:[#allocation5 + $0x60] sm:$0xff] %v213_v19  ;;  %v228_v9 = vmul.f32 %v289_v42, %v625_v55  ;;  %v229_v23 = vmul.f32 %v289_v42, %v631_v59  ;;  %v230_v1 = vmul.f32 %v289_v42, %v637_v62 }
 0x187   :  { %246 = vst [vmem:[#allocation5 + $0x68] sm:$0xff] %v214_v21  ;;  %247 = vst [vmem:[#allocation5 + $0x70] sm:$0xff] %v215_v0  ;;  %v231_v27 = vmul.f32 %v289_v42, %v643_v3  ;;  %v232_v6 = vmul.f32 %v289_v42, %v649_v7 }
 0x188   :  { %248 = vst [vmem:[#allocation5 + $0x78] sm:$0xff] %v216_v2  ;;  %249 = vst [vmem:[#allocation5 + $0x80] sm:$0xff] %v217_v29 }
 0x189   :  { %250 = vst [vmem:[#allocation5 + $0x88] sm:$0xff] %v218_v33  ;;  %251 = vst [vmem:[#allocation5 + $0x90] sm:$0xff] %v219_v37 }
 0x18a   :  { %252 = vst [vmem:[#allocation5 + $0x98] sm:$0xff] %v220_v41  ;;  %253 = vst [vmem:[#allocation5 + $0xa0] sm:$0xff] %v221_v45 }
 0x18b   :  { %254 = vst [vmem:[#allocation5 + $0xa8] sm:$0xff] %v222_v49  ;;  %255 = vst [vmem:[#allocation5 + $0xb0] sm:$0xff] %v223_v53 }
 0x18c   :  { %256 = vst [vmem:[#allocation5 + $0xb8] sm:$0xff] %v224_v57  ;;  %257 = vst [vmem:[#allocation5 + $0xc0] sm:$0xff] %v225_v61 }
 0x18d   :  { %258 = vst [vmem:[#allocation5 + $0xc8] sm:$0xff] %v226_v63  ;;  %259 = vst [vmem:[#allocation5 + $0xd0] sm:$0xff] %v227_v5 }
 0x18e   :  { %260 = vst [vmem:[#allocation5 + $0xd8] sm:$0xff] %v228_v9  ;;  %261 = vst [vmem:[#allocation5 + $0xe0] sm:$0xff] %v229_v23 }
 0x18f   :  { %262 = vst [vmem:[#allocation5 + $0xe8] sm:$0xff] %v230_v1  ;;  %263 = vst [vmem:[#allocation5 + $0xf0] sm:$0xff] %v231_v27 }
 0x190   :  { %264 = vst [vmem:[#allocation5 + $0xf8] sm:$0xff] %v232_v6 }
 0x191   :  { %323 = shalt.err (!%p320_p12)
}
 0x192   :  { %s324_s25 = scalar_lea.hbm %s705_s1, 4096 }
 0x193   :  { %p325_p13 = scmp.ne.s32.totalorder %s705_s1, %s324_s25  ;;  %p328_p0 = scmp.lt.u32.totalorder %s324_s25, %s705_s1 }
 0x195   :  { %p330_p1 = pnand %p328_p0, %p325_p13 }
 0x197   :  { %333 = shalt.err (!%p330_p1)
}
 0x198   :  { %276 = dma.vmem_to_hbm [thread:$0]  %s271_s21, 4096, %s705_s1, [#allocation4], %s339_s16, %s339_s16, %s340_s17  }
 0x199   :  { %336 = dma.done.wait [#allocation4], 4096  }
 0x19a   :  { %337 = vsyncadd [#allocation4], 4294963200 }
 0x19b   :  { %280 = vsyncpa [#allocation3], 1 }
 0x19c   :  { %281 = vsyncpa [#allocation4], 1 }

</bundles_post_ra>
